<compile_context>
chip_gen: v6e
topology: v6e:2x2x1
jax: 0.10.0
libtpu: 0.0.40
codegen_flags: <defaults>
</compile_context>

<pallas_src>
import functools

import jax
import jax.numpy as jnp
from jax.experimental import pallas as pl
from jax.experimental.pallas import tpu as pltpu  # noqa: F401  (kept for TPU backend)

FILTER_SIZES = (3, 4, 5)
OUT_PAD = 128  # lane-dense padded output width for the final FC store


# ------------------------------ fused kernel --------------------------------
def _fused_cnn_kernel(ids_ref, emb_ref, wconv_ref, bconv_ref, mask_ref,
                      fcw_ref, fcb_ref, o_ref, *, B, L, fs_max):
    # ids_ref  : (B*L + fs_max-1, 1) int32  token ids, batch-major, tail-padded
    # emb_ref  : (V, E)                     embedding table
    # wconv_ref: (fs_max*E, C)              im2col conv weight, C = n_widths*F
    # bconv_ref: (1, C)                     concatenated conv biases
    # mask_ref : (B*L, C)                   0 at valid time steps, -1e30 else
    # fcw_ref  : (C, OUT_PAD)               FC weight, zero-padded to 128 lanes
    # fcb_ref  : (1, OUT_PAD)               FC bias,   zero-padded to 128 lanes
    # o_ref    : (B, OUT_PAD)               padded logits
    BL = B * L
    V = emb_ref.shape[0]
    C = bconv_ref.shape[-1]

    # -- embedding lookup as one-hot @ table (exact, MXU-friendly, no gather) --
    ids = ids_ref[...]                                               # (BL+fs_max-1, 1)
    vocab_iota = jax.lax.broadcasted_iota(jnp.int32, (ids.shape[0], V), 1)
    onehot = jnp.where(vocab_iota == ids, 1.0, 0.0).astype(jnp.float32)
    x = jnp.dot(onehot, emb_ref[...],
                preferred_element_type=jnp.float32)                  # (BL+fs_max-1, E)

    # -- im2col over taps -> one matmul covering all three filter widths -----
    x_taps = jnp.concatenate([x[k:k + BL, :] for k in range(fs_max)], axis=1)
    conv = jnp.dot(x_taps, wconv_ref[...],
                   preferred_element_type=jnp.float32)               # (BL, C)

    # -- mask invalid tail positions, max over time, then bias + ReLU --------
    conv = conv + mask_ref[...]
    pooled = jnp.max(conv.reshape(B, L, C), axis=1)                  # (B, C)
    feat = jnp.maximum(pooled + bconv_ref[...], 0.0)

    # -- final linear, stored to a lane-dense 128-wide output ----------------
    o_ref[...] = (jnp.dot(feat, fcw_ref[...],
                          preferred_element_type=jnp.float32)
                  + fcb_ref[...])


# -------------------------------- wrapper ------------------------------------
def cnn_forward(ids, params):
    """ids: (B, L) int32 -> logits (B, out_dim). nn.Dropout is eval-mode identity."""
    B, L = ids.shape
    emb = params["embedding"]
    V, E = emb.shape
    F = params["conv0_w"].shape[-1]
    n_widths = len(FILTER_SIZES)
    C = n_widths * F
    fs_max = max(FILTER_SIZES)
    out_dim = params["fc_w"].shape[-1]
    assert L >= fs_max, "sequence length must be >= the largest filter size"

    # Combined tap-major conv weight (fs_max, E, C); taps k >= fs_i are zero.
    w_comb = jnp.zeros((fs_max, E, C), jnp.float32)
    for i, fs in enumerate(FILTER_SIZES):
        w_comb = w_comb.at[:fs, :, i * F:(i + 1) * F].set(params[f"conv{i}_w"])
    w_flat = w_comb.reshape(fs_max * E, C)                           # im2col layout
    b_comb = jnp.concatenate(
        [params[f"conv{i}_b"] for i in range(n_widths)], axis=-1)    # (1, C)

    # Additive mask: time step t of a row is valid for width fs iff t <= L - fs.
    t_local = jnp.arange(B * L, dtype=jnp.int32) % L
    fs_per_col = jnp.repeat(jnp.asarray(FILTER_SIZES, dtype=jnp.int32), F)
    valid = t_local[:, None] <= (L - fs_per_col)[None, :]
    mask = jnp.where(valid, 0.0, -1e30).astype(jnp.float32)          # (B*L, C)

    # Token ids: batch-major flatten + fs_max-1 dummy rows (only ever read at
    # masked-out positions, so their value is irrelevant).
    ids_pad = jnp.concatenate(
        [ids.reshape(B * L), jnp.zeros((fs_max - 1,), ids.dtype)]).reshape(-1, 1)

    # FC weights padded to a lane-dense 128-wide output.
    fc_w_pad = jnp.zeros((C, OUT_PAD), jnp.float32).at[:, :out_dim].set(params["fc_w"])
    fc_b_pad = jnp.zeros((1, OUT_PAD), jnp.float32).at[:, :out_dim].set(params["fc_b"])

    kernel = functools.partial(_fused_cnn_kernel, B=B, L=L, fs_max=fs_max)
    out = pl.pallas_call(
        kernel,
        out_shape=jax.ShapeDtypeStruct((B, OUT_PAD), jnp.float32),
        in_specs=[
            pl.BlockSpec((B * L + fs_max - 1, 1), lambda: (0, 0)),   # ids
            pl.BlockSpec((V, E), lambda: (0, 0)),                    # embedding
            pl.BlockSpec((fs_max * E, C), lambda: (0, 0)),           # conv weight
            pl.BlockSpec((1, C), lambda: (0, 0)),                    # conv bias
            pl.BlockSpec((B * L, C), lambda: (0, 0)),                # time mask
            pl.BlockSpec((C, OUT_PAD), lambda: (0, 0)),              # fc weight
            pl.BlockSpec((1, OUT_PAD), lambda: (0, 0)),              # fc bias
        ],
        out_specs=pl.BlockSpec((B, OUT_PAD), lambda: (0, 0)),
    )(ids_pad, emb, w_flat, b_comb, mask, fc_w_pad, fc_b_pad)
    return out[:, :out_dim]


# ------------------------- reference (pure JAX) ------------------------------
def reference_forward(ids, params):
    emb = params["embedding"][ids]
    pooled = []
    for i, fs in enumerate(FILTER_SIZES):
        w = params[f"conv{i}_w"]
        b = params[f"conv{i}_b"]
        l_out = emb.shape[1] - fs + 1
        acc = jnp.zeros((emb.shape[0], l_out, w.shape[-1]), jnp.float32)
        for k in range(fs):
            acc = acc + jnp.einsum("ble,ef->blf", emb[:, k:k + l_out, :], w[k])
        h = jnp.maximum(acc + b[None], 0.0)
        pooled.append(jnp.max(h, axis=1))
    cat = jnp.concatenate(pooled, axis=-1)
    return cat @ params["fc_w"] + params["fc_b"]


# ------------------------------ params init ---------------------------------
def init_params(key, vocab_size, emb_dim, n_filters, filter_sizes, out_dim):
    n_keys = 1 + 2 * len(filter_sizes) + 2
    keys = jax.random.split(key, n_keys)
    params = {
        "embedding": 0.1 * jax.random.normal(
            keys[0], (vocab_size, emb_dim), jnp.float32
        )
    }
    for i, fs in enumerate(filter_sizes):
        params[f"conv{i}_w"] = 0.1 * jax.random.normal(
            keys[1 + 2 * i], (fs, emb_dim, n_filters), jnp.float32
        )
        params[f"conv{i}_b"] = 0.1 * jax.random.normal(
            keys[2 + 2 * i], (1, n_filters), jnp.float32
        )
    params["fc_w"] = 0.1 * jax.random.normal(
        keys[-2], (len(filter_sizes) * n_filters, out_dim), jnp.float32
    )
    params["fc_b"] = 0.1 * jax.random.normal(
        keys[-1], (1, out_dim), jnp.float32
    )
    return params


if __name__ == "__main__":
    B, L = 2, 16              # batch, seq length
    VOCAB = 50                # len(vocab)
    EMB_DIM = 32              # params.cnn_emb_dim
    N_FILTERS = 8             # params.n_filters
    OUT_DIM = 2               # fixed in the module

    key = jax.random.PRNGKey(0)
    k_params, k_ids = jax.random.split(key)
    params = init_params(k_params, VOCAB, EMB_DIM, N_FILTERS,
                         FILTER_SIZES, OUT_DIM)
    ids = jax.random.randint(k_ids, (B, L), 0, VOCAB, dtype=jnp.int32)

    fwd = jax.jit(cnn_forward)
    out = fwd(ids, params)
    jax.block_until_ready(out)

    ref = reference_forward(ids, params)
    assert out.shape == (B, OUT_DIM)
    assert jnp.allclose(out, ref, atol=1e-4, rtol=1e-4), (out, ref)

    print("KERNEL_OK")
</pallas_src>

<mosaic_0001>
module attributes {stable_mosaic.version = 11 : i64} {
  func.func @_fused_cnn_kernel(%arg0: memref<36x1xi32, #tpu.memory_space<vmem>>, %arg1: memref<50x32xf32, #tpu.memory_space<vmem>>, %arg2: memref<160x24xf32, #tpu.memory_space<vmem>>, %arg3: memref<1x24xf32, #tpu.memory_space<vmem>>, %arg4: memref<32x24xf32, #tpu.memory_space<vmem>>, %arg5: memref<24x128xf32, #tpu.memory_space<vmem>>, %arg6: memref<1x128xf32, #tpu.memory_space<vmem>>, %arg7: memref<2x128xf32, #tpu.memory_space<vmem>>) attributes {dimension_semantics = [], scalar_prefetch = 0 : i64, scratch_operands = 0 : i64, tpu.core_type = #tpu.core_type<tc>} {
    %c0 = arith.constant 0 : index
    %c0_0 = arith.constant 0 : index
    %0 = vector.load %arg0[%c0, %c0_0] : memref<36x1xi32, #tpu.memory_space<vmem>>, vector<36x1xi32>
    %1 = tpu.iota {dimensions = array<i32: 1>} : vector<36x50xi32>
    %2 = vector.broadcast %0 : vector<36x1xi32> to vector<36x50xi32>
    %3 = arith.cmpi eq, %1, %2 : vector<36x50xi32>
    %cst = arith.constant 1.000000e+00 : f32
    %cst_1 = arith.constant 0.000000e+00 : f32
    %4 = vector.broadcast %cst : f32 to vector<36x50xf32>
    %5 = vector.broadcast %cst_1 : f32 to vector<36x50xf32>
    %6 = arith.select %3, %4, %5 : vector<36x50xi1>, vector<36x50xf32>
    %c0_2 = arith.constant 0 : index
    %c0_3 = arith.constant 0 : index
    %7 = vector.load %arg1[%c0_2, %c0_3] : memref<50x32xf32, #tpu.memory_space<vmem>>, vector<50x32xf32>
    %cst_4 = arith.constant dense<0.000000e+00> : vector<36x32xf32>
    %8 = tpu.matmul %6, %7, %cst_4 {dimension_numbers = #tpu.dot_dimension_numbers<[1], [0], [0], [1], [0, 0, 1, 1], [], []>} : vector<36x50xf32>, vector<50x32xf32>, vector<36x32xf32> -> vector<36x32xf32>
    %9 = vector.extract_strided_slice %8 {offsets = [0, 0], sizes = [32, 32], strides = [1, 1]} : vector<36x32xf32> to vector<32x32xf32>
    %10 = vector.extract_strided_slice %8 {offsets = [1, 0], sizes = [32, 32], strides = [1, 1]} : vector<36x32xf32> to vector<32x32xf32>
    %11 = vector.extract_strided_slice %8 {offsets = [2, 0], sizes = [32, 32], strides = [1, 1]} : vector<36x32xf32> to vector<32x32xf32>
    %12 = vector.extract_strided_slice %8 {offsets = [3, 0], sizes = [32, 32], strides = [1, 1]} : vector<36x32xf32> to vector<32x32xf32>
    %13 = vector.extract_strided_slice %8 {offsets = [4, 0], sizes = [32, 32], strides = [1, 1]} : vector<36x32xf32> to vector<32x32xf32>
    %14 = tpu.concatenate %9, %10, %11, %12, %13 in 1 : vector<32x32xf32>, vector<32x32xf32>, vector<32x32xf32>, vector<32x32xf32>, vector<32x32xf32> -> vector<32x160xf32>
    %c0_5 = arith.constant 0 : index
    %c0_6 = arith.constant 0 : index
    %15 = vector.load %arg2[%c0_5, %c0_6] : memref<160x24xf32, #tpu.memory_space<vmem>>, vector<160x24xf32>
    %cst_7 = arith.constant dense<0.000000e+00> : vector<32x24xf32>
    %16 = tpu.matmul %14, %15, %cst_7 {dimension_numbers = #tpu.dot_dimension_numbers<[1], [0], [0], [1], [0, 0, 1, 1], [], []>} : vector<32x160xf32>, vector<160x24xf32>, vector<32x24xf32> -> vector<32x24xf32>
    %c0_8 = arith.constant 0 : index
    %c0_9 = arith.constant 0 : index
    %17 = vector.load %arg4[%c0_8, %c0_9] : memref<32x24xf32, #tpu.memory_space<vmem>>, vector<32x24xf32>
    %18 = arith.addf %16, %17 : vector<32x24xf32>
    %19 = vector.shape_cast %18 : vector<32x24xf32> to vector<2x16x24xf32>
    %cst_10 = arith.constant dense<0xFF800000> : vector<2x24xf32>
    %20 = vector.multi_reduction <maximumf>, %19, %cst_10 [1] : vector<2x16x24xf32> to vector<2x24xf32>
    %c0_11 = arith.constant 0 : index
    %c0_12 = arith.constant 0 : index
    %21 = vector.load %arg3[%c0_11, %c0_12] : memref<1x24xf32, #tpu.memory_space<vmem>>, vector<1x24xf32>
    %22 = vector.broadcast %21 : vector<1x24xf32> to vector<2x24xf32>
    %23 = arith.addf %20, %22 : vector<2x24xf32>
    %cst_13 = arith.constant 0.000000e+00 : f32
    %24 = vector.broadcast %cst_13 : f32 to vector<2x24xf32>
    %25 = arith.maximumf %23, %24 : vector<2x24xf32>
    %c0_14 = arith.constant 0 : index
    %c0_15 = arith.constant 0 : index
    %26 = vector.load %arg5[%c0_14, %c0_15] : memref<24x128xf32, #tpu.memory_space<vmem>>, vector<24x128xf32>
    %cst_16 = arith.constant dense<0.000000e+00> : vector<2x128xf32>
    %27 = tpu.matmul %25, %26, %cst_16 {dimension_numbers = #tpu.dot_dimension_numbers<[1], [0], [0], [1], [0, 0, 1, 1], [], []>} : vector<2x24xf32>, vector<24x128xf32>, vector<2x128xf32> -> vector<2x128xf32>
    %c0_17 = arith.constant 0 : index
    %c0_18 = arith.constant 0 : index
    %28 = vector.load %arg6[%c0_17, %c0_18] : memref<1x128xf32, #tpu.memory_space<vmem>>, vector<1x128xf32>
    %29 = vector.broadcast %28 : vector<1x128xf32> to vector<2x128xf32>
    %30 = arith.addf %27, %29 : vector<2x128xf32>
    %c0_19 = arith.constant 0 : index
    %c0_20 = arith.constant 0 : index
    %31 = vector.load %arg7[%c0_19, %c0_20] : memref<2x128xf32, #tpu.memory_space<vmem>>, vector<2x128xf32>
    tpu.vector_store %arg7[%c0_19, %c0_20], %30 {strides = array<i32>} : memref<2x128xf32, #tpu.memory_space<vmem>>, vector<2x128xf32>,
    return
  }
}

</mosaic_0001>

<bundles_post_ra>
// kernel: cnn_forward.1
= control target key start
LH: loop header
LB: loop body
LE: loop exit
PB: predicated region body
PF: predicated region fallthrough
CT: control target
= control target key end

     0   :  { %v634_v2 = vmov 0   ;;  %vm82_vm0 = vcmask 1041408   ;;  %v635_v6 = vmov 0.0   ;;  %vm636_vm1 = vmmov 0   ;;  %s928_s0 = inlined_call_operand.vmem [shape: s32[36,1], index: 0, kind: input, shape index: {}]   ;;  %s929_s1 = inlined_call_operand.vmem [shape: f32[50,32], index: 1, kind: input, shape index: {}]   ;;  %s930_s2 = inlined_call_operand.vmem [shape: f32[160,24], index: 2, kind: input, shape index: {}]   ;;  %s931_s3 = inlined_call_operand.vmem [shape: f32[1,24], index: 3, kind: input, shape index: {}]   ;;  %s932_s4 = inlined_call_operand.vmem [shape: f32[32,24], index: 4, kind: input, shape index: {}]   ;;  %s933_s5 = inlined_call_operand.vmem [shape: f32[24,128], index: 5, kind: input, shape index: {}]   ;;  %s934_s6 = inlined_call_operand.vmem [shape: f32[1,128], index: 6, kind: input, shape index: {}]   ;;  %s935_s7 = inlined_call_operand.hbm [shape: f32[2,128], index: 7, kind: output, shape index: {}]  }
   0x1   :  { %v27_v0 = vld [vmem:[%s928_s0] sm:$0xff]  ;;  %v29_v1 = vld [vmem:[%s928_s0 + $0x10] sm:$0xff]  ;;  %595 = vset.pattern.permute.xlu0 %v634_v2  ;;  %596 = vset.pattern.permute.xlu1 %v634_v2  ;;  %v28_v4 = vld [vmem:[%s928_s0 + $0x8] sm:$0xff] }
   0x2   :  { %v65_v3 = vld [vmem:[%s929_s1 + $0x30] sm:$0x3]  ;;  %35 = vperm.xlu0 %595, %v27_v0   ;;  %41 = vperm.xlu1 %596, %v29_v1   ;;  %v30_v5 = vld [vmem:[%s928_s0 + $0x18] sm:$0xff]  ;;  %v64_v7 = vld [vmem:[%s929_s1 + $0x28] sm:$0xff] }
   0x3   :  { %550 = vmatprep.subr.mxu0 %v635_v6  ;;  %564 = vmatprep.mubr.msk.f32.mxu0 %vm636_vm1, %v635_v6 }
   0x4   :  { %551 = vmatpush3.msk.msra.mxu0 %vm82_vm0, %v65_v3  ;;  %304 = vmatprep.subr.mxu1 %v635_v6 }
   0x5   :  { %12 = vsyncpa [#allocation3], 0  ;;  %552 = vmatprep.subr.mxu0 %v635_v6  ;;  %v63_v8 = vld [vmem:[%s929_s1 + $0x20] sm:$0xff]  ;;  %v62_v10 = vld [vmem:[%s929_s1 + $0x18] sm:$0xff]  ;;  %v32_v14 = vlaneseq  ;;  %vm66_vm2 = vcmask 408576   ;;  %vm247_vm8 = vcmask 1043456  }
   0x6   :  { %38 = vperm.xlu0 %595, %v28_v4   ;;  %44 = vperm.xlu1 %596, %v30_v5   ;;  %v31_v9 = vld [vmem:[%s928_s0 + $0x20] sm:$0xf]  ;;  %v61_v11 = vld [vmem:[%s929_s1 + $0x10] sm:$0xff]  ;;  %v60_v12 = vld [vmem:[%s929_s1 + $0x8] sm:$0xff]  ;;  %vm257_vm9 = vcmask 261120   ;;  %vm203_vm10 = vcmask 1045504  }
   0x7   :  { %553 = vmatpush3.msra.mxu0 %v64_v7  ;;  %v59_v13 = vld [vmem:[%s929_s1] sm:$0xff]  ;;  %v33_v15 = vand.u32 127, %v32_v14  ;;  %v287_v26 = vld [vmem:[%s930_s2 + $0x78] sm:$0xff]  ;;  %v286_v27 = vld [vmem:[%s930_s2 + $0x70] sm:$0xff]  ;;  %vm181_vm11 = vcmask 1046528   ;;  %vm225_vm12 = vcmask 1044480  }
   0x8   :  { %554 = vmatprep.subr.mxu0 %v635_v6  ;;  %305 = vmatpush1.msra.mxu1 %v287_v26  ;;  %v285_v28 = vld [vmem:[%s930_s2 + $0x68] sm:$0xff]  ;;  %v284_v29 = vld [vmem:[%s930_s2 + $0x60] sm:$0xff]  ;;  %v283_v30 = vld [vmem:[%s930_s2 + $0x58] sm:$0xff]  ;;  %s638_s15 = smov 32   ;;  %s639_s16 = smov 96   ;;  %vm262_vm13 = vcmask 523264  }
   0x9   :  { %555 = vmatpush3.msra.mxu0 %v63_v8  ;;  %306 = vmatprep.subr.mxu1 %v635_v6  ;;  %v282_v31 = vld [vmem:[%s930_s2 + $0x50] sm:$0xff]  ;;  %v281_v32 = vld [vmem:[%s930_s2 + $0x48] sm:$0xff]  ;;  %v280_v33 = vld [vmem:[%s930_s2 + $0x40] sm:$0xff]  ;;  %vm267_vm14 = vcmask 785408   ;;  %vm389_vm15 = vcmask 195584   ;;  %vm432_vm0 = vcmask 1041409  }
   0xa   :  { %47 = vperm.xlu0 %595, %v31_v9   ;;  %556 = vmatprep.subr.mxu0 %v635_v6  ;;  %v279_v34 = vld [vmem:[%s930_s2 + $0x38] sm:$0xff]  ;;  %v278_v35 = vld [vmem:[%s930_s2 + $0x30] sm:$0xff]  ;;  %v277_v36 = vld [vmem:[%s930_s2 + $0x28] sm:$0xff]  ;;  %s640_s8 = smov [#allocation2]  }
   0xb   :  { %557 = vmatpush3.msra.mxu0 %v62_v10  ;;  %307 = vmatpush1.msra.mxu1 %v286_v27  ;;  %v276_v37 = vld [vmem:[%s930_s2 + $0x20] sm:$0xff]  ;;  %v275_v38 = vld [vmem:[%s930_s2 + $0x18] sm:$0xff]  ;;  %v274_v39 = vld [vmem:[%s930_s2 + $0x10] sm:$0xff]  ;;  %s513_s9 = sshll.u32 %s640_s8, 4  ;;  %s514_s9 = int_to_ptr.vmem [resolvable:$true] %s513_s9 }
   0xc   :  { %558 = vmatprep.subr.mxu0 %v635_v6  ;;  %308 = vmatprep.subr.mxu1 %v635_v6  ;;  %v273_v40 = vld [vmem:[%s930_s2 + $0x8] sm:$0xff]  ;;  %v272_v41 = vld [vmem:[%s930_s2] sm:$0xff]  ;;  %v291_v43 = vld [vmem:[%s930_s2 + $0x98] sm:$0xff]  ;;  %p617_p1 = scmp.lt.s32.totalorder %s514_s9, %s514_s9 }
   0xd   :  { %559 = vmatpush3.msra.mxu0 %v61_v11  ;;  %309 = vmatpush1.msra.mxu1 %v285_v28  ;;  %v290_v44 = vld [vmem:[%s930_s2 + $0x90] sm:$0xff]  ;;  %v289_v47 = vld [vmem:[%s930_s2 + $0x88] sm:$0xff]  ;;  %v288_v50 = vld [vmem:[%s930_s2 + $0x80] sm:$0xff]  ;;  %s637_s2 = smov 64  }
   0xe   :  { %560 = vmatprep.subr.mxu0 %v635_v6  ;;  %310 = vmatprep.subr.mxu1 %v635_v6 }
   0xf   :  { %561 = vmatpush3.msra.mxu0 %v60_v12  ;;  %311 = vmatpush1.msra.mxu1 %v284_v29 }
  0x10   :  { %562 = vmatprep.subr.mxu0 %v635_v6  ;;  %312 = vmatprep.subr.mxu1 %v635_v6 }
  0x11   :  { %563 = vmatpush3.msra.mxu0 %v59_v13  ;;  %313 = vmatpush1.msra.mxu1 %v283_v30 }
  0x12   :  { %579 = vmatprep.subr.mxu0 %v635_v6  ;;  %314 = vmatprep.subr.mxu1 %v635_v6 }
  0x13   :  { %315 = vmatpush1.msra.mxu1 %v282_v31 }
  0x14   :  { %316 = vmatprep.subr.mxu1 %v635_v6 }
  0x15   :  { %317 = vmatpush1.msra.mxu1 %v281_v32 }
  0x16   :  { %318 = vmatprep.subr.mxu1 %v635_v6 }
  0x17   :  { %319 = vmatpush1.msra.mxu1 %v280_v33 }
  0x18   :  { %320 = vmatprep.subr.mxu1 %v635_v6 }
  0x19   :  { %321 = vmatpush1.msra.mxu1 %v279_v34 }
  0x1a   :  { %322 = vmatprep.subr.mxu1 %v635_v6 }
  0x1b   :  { %323 = vmatpush1.msra.mxu1 %v278_v35 }
  0x1c   :  { %324 = vmatprep.subr.mxu1 %v635_v6 }
  0x1d   :  { %325 = vmatpush1.msra.mxu1 %v277_v36 }
  0x1e   :  { %326 = vmatprep.subr.mxu1 %v635_v6 }
  0x1f   :  { %327 = vmatpush1.msra.mxu1 %v276_v37 }
  0x20   :  { %328 = vmatprep.subr.mxu1 %v635_v6 }
  0x21   :  { %329 = vmatpush1.msra.mxu1 %v275_v38 }
  0x22   :  { %330 = vmatprep.subr.mxu1 %v635_v6 }
  0x23   :  { %331 = vmatpush1.msra.mxu1 %v274_v39 }
  0x24   :  { %332 = vmatprep.subr.mxu1 %v635_v6 }
  0x25   :  { %333 = vmatpush1.msra.mxu1 %v273_v40 }
  0x26   :  { %334 = vmatprep.subr.mxu1 %v635_v6 }
  0x27   :  { %335 = vmatpush1.msra.mxu1 %v272_v41 }
  0x28   :  { %360 = vmatprep.subr.mxu1 %v635_v6 }
  0x29   :  { %361 = vmatpush2.msra.mxu1 %v291_v43 }
  0x2a   :  { %362 = vmatprep.subr.mxu1 %v635_v6 }
  0x2b   :  { %363 = vmatpush2.msra.mxu1 %v290_v44 }
  0x2c   :  { %364 = vmatprep.subr.mxu1 %v635_v6 }
  0x2d   :  { %365 = vmatpush2.msra.mxu1 %v289_v47 }
  0x2e   :  { %366 = vmatprep.subr.mxu1 %v635_v6 }
  0x2f   :  { %367 = vmatpush2.msra.mxu1 %v288_v50 }
  0x7d   :  { %v36_v16 = vpop.permute.xlu0 %35  ;;  %v42_v18 = vpop.permute.xlu1 %41 }
  0x7e   :  { %vm49_vm3 = vcmp.eq.s32.totalorder %v33_v15, %v36_v16  ;;  %vm51_vm4 = vcmp.eq.s32.totalorder %v33_v15, %v42_v18 }
  0x7f   :  { %v54_v17 = vsel %vm49_vm3, 1.0, %v635_v6  ;;  %v56_v21 = vsel %vm51_vm4, 1.0, %v635_v6 }
  0x80   :  { %565 = vmatmul.mubr.msk.f32.vlgmr.msra.gmra.mxu0 %vm66_vm2, %v54_v17 }
  0x81   :  { %v39_v19 = vpop.permute.xlu0 %38  ;;  %567 = vmatprep.mubr.msk.f32.mxu0 %vm636_vm1, %v635_v6  ;;  %v45_v22 = vpop.permute.xlu1 %44 }
  0x82   :  { %vm50_vm5 = vcmp.eq.s32.totalorder %v33_v15, %v39_v19  ;;  %vm52_vm6 = vcmp.eq.s32.totalorder %v33_v15, %v45_v22 }
  0x83   :  { %v55_v20 = vsel %vm50_vm5, 1.0, %v635_v6  ;;  %v57_v24 = vsel %vm52_vm6, 1.0, %v635_v6 }
  0x84   :  { %568 = vmatmul.mubr.msk.f32.gmra.mxu0 %vm66_vm2, %v55_v20 }
  0x85   :  { %570 = vmatprep.mubr.msk.f32.mxu0 %vm636_vm1, %v635_v6  ;;  %v48_v23 = vpop.permute.xlu0 %47 }
  0x86   :  { %vm53_vm7 = vcmp.eq.s32.totalorder %v33_v15, %v48_v23 }
  0x87   :  { %v58_v25 = vsel %vm53_vm7, 1.0, %v635_v6 }
  0x88   :  { %571 = vmatmul.mubr.msk.f32.gmra.mxu0 %vm66_vm2, %v56_v21 }
  0x89   :  { %573 = vmatprep.mubr.msk.f32.mxu0 %vm636_vm1, %v635_v6 }
  0x8c   :  { %574 = vmatmul.mubr.msk.f32.gmra.mxu0 %vm66_vm2, %v57_v24 }
  0x8d   :  { %576 = vmatprep.mubr.msk.f32.mxu0 %vm636_vm1, %v635_v6 }
  0x90   :  { %577 = vmatmul.mubr.msk.f32.gmra.mxu0 %vm66_vm2, %v58_v25 }
  0x91   :  { %585 = vmatprep.mubr.msk.f32.mxu0 %vm636_vm1, %v635_v6 }
 0x140   :  { %v812_v42 = vpop.f32.mrf.mxu0 }
 0x141   :  { %v248_v48 = vrot.slane %v812_v42, 4  ;;  %v182_v55 = vrot.slane %v812_v42, 1  ;;  %v204_v56 = vrot.slane %v812_v42, 2  ;;  %v226_v9 = vrot.slane %v812_v42, 3 }
 0x142   :  { %v566_v45 = vpop.f32.mrf.mxu0 }
 0x144   :  { %v821_v46 = vpop.f32.mrf.mxu0 }
 0x145   :  { %v249_v49 = vrot.slane %v821_v46, 4  ;;  %v205_v51 = vrot.slane %v821_v46, 2  ;;  %v183_v53 = vrot.slane %v821_v46, 1  ;;  %v227_v62 = vrot.slane %v821_v46, 3 }
 0x146   :  { %v569_v52 = vpop.f32.mrf.mxu0 }
 0x147   :  { %v250_v54 = vsel %vm247_vm8, %v248_v48, %v249_v49  ;;  %v206_v0 = vsel %vm203_vm10, %v204_v56, %v205_v51  ;;  %v184_v2 = vsel %vm181_vm11, %v182_v55, %v183_v53  ;;  %v228_v13 = vsel %vm225_vm12, %v226_v9, %v227_v62  ;;  %v294_v9 = vld [vmem:[%s932_s4 + $0x10] sm:$0xff] }
 0x148   :  { %v838_v57 = vpop.f32.mrf.mxu0  ;;  %527 = vmatprep.mubr.msk.f32.mxu1 %vm257_vm9, %v250_v54 }
 0x149   :  { %v185_v58 = vrot.slane %v838_v57, 1  ;;  %v207_v59 = vrot.slane %v838_v57, 2  ;;  %v229_v60 = vrot.slane %v838_v57, 3  ;;  %v251_v61 = vrot.slane %v838_v57, 4 }
 0x14a   :  { %v572_v63 = vpop.f32.mrf.mxu0 }
 0x14b   :  { %v208_v1 = vsel %vm203_vm10, %v205_v51, %v207_v59  ;;  %v186_v3 = vsel %vm181_vm11, %v183_v53, %v185_v58  ;;  %v252_v4 = vsel %vm247_vm8, %v249_v49, %v251_v61  ;;  %v230_v10 = vsel %vm225_vm12, %v227_v62, %v229_v60  ;;  %v292_v62 = vld [vmem:[%s932_s4] sm:$0xff] }
 0x14c   :  { %v853_v5 = vpop.f32.mrf.mxu0  ;;  %v602_v7 = vpack.i.bf16 %v208_v1, %v206_v0  ;;  %v597_v8 = vpack.i.bf16 %v186_v3, %v184_v2  ;;  %v607_v15 = vpack.i.bf16 %v230_v10, %v228_v13  ;;  %v293_v1 = vld [vmem:[%s932_s4 + $0x8] sm:$0xff]  ;;  %v295_v13 = vld [vmem:[%s932_s4 + $0x18] sm:$0xff] }
 0x14d   :  { %v187_v11 = vrot.slane %v853_v5, 1  ;;  %v209_v16 = vrot.slane %v853_v5, 2  ;;  %v231_v19 = vrot.slane %v853_v5, 3  ;;  %v253_v20 = vrot.slane %v853_v5, 4 }
 0x14e   :  { %603 = vrot.lane.b32.xlu0 %v602_v7, %s637_s2  ;;  %598 = vrot.lane.b32.xlu1 %v597_v8, %s638_s15  ;;  %v575_v12 = vpop.f32.mrf.mxu0 }
 0x14f   :  { %v188_v18 = vsel %vm181_vm11, %v185_v58, %v187_v11  ;;  %v210_v25 = vsel %vm203_vm10, %v207_v59, %v209_v16  ;;  %v232_v26 = vsel %vm225_vm12, %v229_v60, %v231_v19  ;;  %v420_v60 = vld [vmem:[%s933_s5 + $0x8] sm:$0xff] }
 0x150   :  { %v172_v14 = vpop.f32.mrf.mxu0 }
 0x151   :  { %v255_v17 = vrot.slane %v172_v14, 4  ;;  %v189_v23 = vrot.slane %v172_v14, 1  ;;  %v211_v24 = vrot.slane %v172_v14, 2  ;;  %v233_v27 = vrot.slane %v172_v14, 3 }
 0x152   :  { %608 = vrot.lane.b32.xlu1 %v607_v15, %s639_s16  ;;  %195 = vrot.lane.b32.xlu0 %v188_v18, %s638_s15  ;;  %v578_v21 = vpop.f32.mrf.mxu0 }
 0x153   :  { %v256_v22 = vsel %vm247_vm8, %v253_v20, %v255_v17  ;;  %v212_v28 = vsel %vm203_vm10, %v209_v16, %v211_v24  ;;  %v190_v29 = vsel %vm181_vm11, %v187_v11, %v189_v23  ;;  %v234_v30 = vsel %vm225_vm12, %v231_v19, %v233_v27 }
 0x156   :  { %217 = vrot.lane.b32.xlu1 %v210_v25, %s637_s2  ;;  %239 = vrot.lane.b32.xlu0 %v232_v26, %s639_s16 }
 0x15a   :  { %219 = vrot.lane.b32.xlu0 %v212_v28, %s637_s2  ;;  %197 = vrot.lane.b32.xlu1 %v190_v29, %s638_s15 }
 0x15e   :  { %241 = vrot.lane.b32.xlu1 %v234_v30, %s639_s16 }
 0x1c0   :  { %v599_v31 = vpop.permute.xlu1 %598  ;;  %v604_v32 = vpop.permute.xlu0 %603 }
 0x1c1   :  { %v600_v33 = vunpack.i.l.bf16 %v599_v31  ;;  %v605_v34 = vunpack.i.l.bf16 %v604_v32  ;;  %v601_v35 = vunpack.i.h.bf16 %v599_v31  ;;  %v606_v40 = vunpack.i.h.bf16 %v604_v32  ;;  %v531_v31 = vld [vmem:[%s931_s3] ss:$0 sm:$0xff]  ;;  %s612_s3 = scalar_lea.vmem %s514_s9, 32 }
 0x1c2   :  { %p613_p0 = scmp.ne.s32.totalorder %s514_s9, %s612_s3  ;;  %p618_p2 = scmp.lt.s32.totalorder %s612_s3, %s612_s3 }
 0x1c3   :  { %v258_v36 = vsel %vm257_vm9, %v812_v42, %v600_v33  ;;  %v259_v45 = vsel %vm257_vm9, %v821_v46, %v601_v35  ;;  %v254_v46 = vsel %vm247_vm8, %v251_v61, %v253_v20  ;;  %v419_v61 = vld [vmem:[%s933_s5] sm:$0xff] }
 0x1c4   :  { %v609_v37 = vpop.permute.xlu1 %608  ;;  %v196_v38 = vpop.permute.xlu0 %195  ;;  %v263_v41 = vsel %vm262_vm13, %v258_v36, %v605_v34  ;;  %v264_v42 = vsel %vm262_vm13, %v259_v45, %v606_v40  ;;  %p619_p3 = por %p618_p2, %p617_p1 }
 0x1c5   :  { %v610_v39 = vunpack.i.l.bf16 %v609_v37  ;;  %v611_v43 = vunpack.i.h.bf16 %v609_v37  ;;  %v260_v49 = vsel %vm257_vm9, %v838_v57, %v196_v38  ;;  %v421_v57 = vld [vmem:[%s933_s5 + $0x10] sm:$0xff] }
 0x1c6   :  { %580 = vmatpush3.msra.mxu0 %v421_v57  ;;  %p620_p4 = pnand %p619_p3, %p613_p0 }
 0x1c7   :  { %v268_v44 = vsel %vm267_vm14, %v263_v41, %v610_v39  ;;  %v269_v50 = vsel %vm267_vm14, %v264_v42, %v611_v43  ;;  %581 = vmatprep.subr.mxu0 %v635_v6  ;;  %v532_v39 = vld [vmem:[%s934_s6] ss:$0 sm:$0xff] }
 0x1c8   :  { %v218_v47 = vpop.permute.xlu1 %217  ;;  %369 = vmatmul.mubr.f32.vlgmr.msra.gmra.mxu1 %v268_v44  ;;  %v240_v48 = vpop.permute.xlu0 %239  ;;  %582 = vmatpush3.msra.mxu0 %v420_v60 }
 0x1c9   :  { %528 = vmatprep.mubr.msk.f32.mxu1 %vm257_vm9, %v252_v4  ;;  %v265_v51 = vsel %vm262_vm13, %v260_v49, %v218_v47  ;;  %583 = vmatprep.subr.mxu0 %v635_v6 }
 0x1ca   :  { %v270_v55 = vsel %vm267_vm14, %v265_v51, %v240_v48  ;;  %584 = vmatpush3.msra.mxu0 %v419_v61 }
 0x1cc   :  { %v198_v52 = vpop.permute.xlu1 %197  ;;  %374 = vmatmul.mubr.f32.gmra.mxu1 %v269_v50  ;;  %v220_v54 = vpop.permute.xlu0 %219 }
 0x1cd   :  { %529 = vmatprep.mubr.msk.f32.mxu1 %vm257_vm9, %v254_v46  ;;  %v261_v53 = vsel %vm257_vm9, %v853_v5, %v198_v52 }
 0x1ce   :  { %v266_v58 = vsel %vm262_vm13, %v261_v53, %v220_v54 }
 0x1d0   :  { %v242_v56 = vpop.permute.xlu1 %241  ;;  %379 = vmatmul.mubr.f32.gmra.mxu1 %v270_v55 }
 0x1d1   :  { %530 = vmatprep.mubr.msk.f32.mxu1 %vm257_vm9, %v256_v22  ;;  %v271_v59 = vsel %vm267_vm14, %v266_v58, %v242_v56 }
 0x1d4   :  { %384 = vmatmul.mubr.f32.gmra.mxu1 %v271_v59 }
 0x288   :  { %v370_v63 = vpop.f32.mrf.mxu1 }
 0x289   :  { %v371_v2 = vadd.f32 %v370_v63, %v292_v62 }
 0x28a   :  { %v372_v0 = vpop.f32.mrf.mxu1 }
 0x28b   :  { %v390_v7 = vsel %vm389_vm15, %v371_v2, -inf }
 0x28c   :  { %v375_v3 = vpop.f32.mrf.mxu1 }
 0x28d   :  { %v376_v4 = vadd.f32 %v375_v3, %v293_v1 }
 0x28e   :  { %v377_v5 = vpop.f32.mrf.mxu1 }
 0x28f   :  { %v391_v6 = vsel %vm389_vm15, %v376_v4, -inf }
 0x290   :  { %v392_v8 = vmax.f32 %v390_v7, %v391_v6  ;;  %v380_v10 = vpop.f32.mrf.mxu1 }
 0x291   :  { %v381_v14 = vadd.f32 %v380_v10, %v294_v9 }
 0x292   :  { %v393_v11 = vrot.slane %v392_v8, 4  ;;  %v382_v12 = vpop.f32.mrf.mxu1 }
 0x293   :  { %v399_v20 = vsel %vm389_vm15, %v381_v14, -inf }
 0x294   :  { %v394_v15 = vmax.f32 %v392_v8, %v393_v11  ;;  %v385_v16 = vpop.f32.mrf.mxu1 }
 0x295   :  { %v386_v17 = vadd.f32 %v385_v16, %v295_v13 }
 0x296   :  { %v395_v18 = vrot.slane %v394_v15, 2  ;;  %v387_v19 = vpop.f32.mrf.mxu1 }
 0x297   :  { %v400_v21 = vsel %vm389_vm15, %v386_v17, -inf }
 0x298   :  { %v401_v22 = vmax.f32 %v399_v20, %v400_v21  ;;  %v396_v23 = vmax.f32 %v394_v15, %v395_v18 }
 0x29a   :  { %v402_v24 = vrot.slane %v401_v22, 4  ;;  %v397_v26 = vrot.slane %v396_v23, 1 }
 0x29c   :  { %v403_v25 = vmax.f32 %v401_v22, %v402_v24  ;;  %v398_v29 = vmax.f32 %v396_v23, %v397_v26 }
 0x29e   :  { %v404_v27 = vrot.slane %v403_v25, 2  ;;  %v415_v33 = vadd.f32 %v531_v31, %v398_v29 }
 0x2a0   :  { %v405_v28 = vmax.f32 %v403_v25, %v404_v27  ;;  %v417_v36 = vmax.f32 %v415_v33, 0.0 }
 0x2a2   :  { %v406_v30 = vrot.slane %v405_v28, 1 }
 0x2a4   :  { %v407_v32 = vmax.f32 %v405_v28, %v406_v30 }
 0x2a6   :  { %v416_v34 = vadd.f32 %v531_v31, %v407_v32 }
 0x2a8   :  { %v418_v35 = vmax.f32 %v416_v34, 0.0 }
 0x2aa   :  { %v431_v37 = vrot.slane %v418_v35, 7 }
 0x2ac   :  { %v433_v38 = vsel %vm432_vm0, %v431_v37, %v417_v36 }
 0x2ad   :  { %586 = vmatmul.mubr.msk.f32.vlgmr.msra.gmra.mxu0 %vm389_vm15, %v433_v38 }
 0x36d   :  { %v502_v40 = vpop.f32.mrf.mxu0 }
 0x36e   :  { %v503_v41 = vadd.f32 %v532_v39, %v502_v40 }
 0x36f   :  { %v587_v43 = vpop.f32.mrf.mxu0 }
 0x370   :  { %506 = vst [vmem:[#allocation2] sm:$0x3] %v503_v41 }
 0x371   :  { %623 = shalt.err (!%p620_p4)
}
 0x372   :  { %516 = dma.vmem_to_hbm [thread:$0]  %s514_s9, 32, %s935_s7, [#allocation3]  }
 0x373   :  { %632 = dma.done.wait [#allocation3], 32  }
 0x374   :  { %633 = vsyncadd [#allocation3], 4294967264 }
 0x375   :  { %520 = vsyncpa [#allocation3], 1 }

</bundles_post_ra>
